<compile_context>
chip_gen: v6e
topology: v6e:2x2x1
jax: 0.10.0
libtpu: 0.0.40
codegen_flags: <defaults>
</compile_context>

<pallas_src>
from functools import partial

import jax
import jax.numpy as jnp
from jax import lax
from jax.experimental import pallas as pl
from jax.experimental.pallas import tpu as pltpu

_PAD = 128  # lane-aligned halo margin so every 3x3 tap is a plain static slice
_OFFSETS = [(dy - 1, dx - 1) for dy in range(3) for dx in range(3)]


# -----------------------------------------------------------------------------
# Fused Pallas kernel: conv3x3+ReLU -> conv3x3+ReLU -> 1x1 head, `ips` images
# per grid step.
# -----------------------------------------------------------------------------
def _fused_kernel(x_ref, w1_ref, b1_ref, w2_ref, b2_ref, w3_ref, b3_ref,
                  o_ref, act_ref, stk1_ref, stk2_ref,
                  *, H, W, ips, Cin, Feat, Cb, Nc):
    HW = H * W
    Ctot = Cin + Cb + Feat
    bases = [_PAD + j * (HW + _PAD) for j in range(ips)]

    # Horizontal border masks generated in-kernel (no HBM mask table).
    col = lax.broadcasted_iota(jnp.int32, (1, HW), 1) % W
    mask_l = (col >= 1).astype(jnp.float32)        # tap ox == -1
    mask_r = (col <= W - 2).astype(jnp.float32)    # tap ox == +1

    # Zero only the halo margins of the tap-source row groups (x rows, feature
    # rows). Centers are fully overwritten below; `out` rows' margins are never
    # read. Done every step so it is correct under megacore grid sharding.
    zx = jnp.zeros((Cin, _PAD), jnp.float32)
    zf = jnp.zeros((Feat, _PAD), jnp.float32)
    act_ref[0:Cin, 0:_PAD] = zx
    act_ref[Cin + Cb:Ctot, 0:_PAD] = zf
    for b in bases:
        act_ref[0:Cin, b + HW:b + HW + _PAD] = zx
        act_ref[Cin + Cb:Ctot, b + HW:b + HW + _PAD] = zf

    # Stage inputs into the x rows of the activation line buffer.
    for j, b in enumerate(bases):
        act_ref[0:Cin, b:b + HW] = x_ref[j]

    def conv3x3_relu(row_lo, cg, stk_ref, w_ref, b_ref):
        # Stage the 9 shifted taps into one stacked (9*cg, ips*HW) activation,
        # then contract against (Cout, 9*cg) weights in a single MXU dot.
        for t, (oy, ox) in enumerate(_OFFSETS):
            d = oy * W + ox
            for j, b in enumerate(bases):
                tap = act_ref[row_lo:row_lo + cg, b + d:b + d + HW]
                if ox == -1:
                    tap = tap * mask_l
                elif ox == 1:
                    tap = tap * mask_r
                stk_ref[t * cg:(t + 1) * cg, j * HW:(j + 1) * HW] = tap
        acc = jnp.dot(w_ref[...], stk_ref[...],
                      preferred_element_type=jnp.float32)
        return jnp.maximum(acc + b_ref[...], 0.0)

    # features_extractor: features = relu(conv1(x)); out = relu(conv2(features))
    feats = conv3x3_relu(0, Cin, stk1_ref, w1_ref, b1_ref)            # (Feat, L)
    for j, b in enumerate(bases):
        act_ref[Cin + Cb:Ctot, b:b + HW] = feats[:, j * HW:(j + 1) * HW]
    out2 = conv3x3_relu(Cin + Cb, Feat, stk2_ref, w2_ref, b2_ref)     # (Cb, L)
    for j, b in enumerate(bases):
        act_ref[Cin:Cin + Cb, b:b + HW] = out2[:, j * HW:(j + 1) * HW]

    # human_seg 1x1 head over concat([x, out, features]); act_ref rows already
    # sit in that order, so it is one K=Ctot dot per image.
    for j, b in enumerate(bases):
        logits = jnp.dot(w3_ref[...], act_ref[:, b:b + HW],
                         preferred_element_type=jnp.float32) + b3_ref[...]
        o_ref[j] = logits


# -----------------------------------------------------------------------------
# Chip-aware batch folding: fold the batch into one grid step on single-TC
# chips (v5e / v6e); keep one image per step elsewhere so "parallel" semantics
# can shard the batch across TensorCores (v7x). Mis-detection only affects
# performance, never correctness.
# -----------------------------------------------------------------------------
def _images_per_step(n):
    try:
        kind = jax.devices()[0].device_kind.lower()
    except Exception:
        kind = ""
    single_tc = ("lite" in kind) or ("v5e" in kind) or ("v6e" in kind)
    ips = n if single_tc else 1
    if ips < 1 or n % ips:
        ips = 1
    return ips


# -----------------------------------------------------------------------------
# Public wrapper (NCHW in, NCHW out) — equivalent of CoreHumanSegModel.forward
# -----------------------------------------------------------------------------
def core_human_seg_forward(inputs_nchw, params, images_per_step=None):
    N, Cin, H, W = inputs_nchw.shape
    HW = H * W
    feat = params["b1"].shape[0]
    cb = params["b2"].shape[0]
    nc = params["b3"].shape[0]
    ctot = Cin + cb + feat

    ips = images_per_step if images_per_step is not None else _images_per_step(N)
    if N % ips:
        ips = 1

    x = inputs_nchw.reshape(N, Cin, HW).astype(jnp.float32)   # free reshape

    # Weight prep (tiny, trace-time): HWIO conv weights -> (Cout, 9*Cin) so each
    # conv layer is a single dot against the stacked-tap activation. w3 stays
    # un-split; its row order already matches the line-buffer row order.
    w1s = jnp.transpose(params["w1"], (3, 0, 1, 2)).reshape(feat, 9 * Cin)
    w1s = w1s.astype(jnp.float32)
    w2s = jnp.transpose(params["w2"], (3, 0, 1, 2)).reshape(cb, 9 * feat)
    w2s = w2s.astype(jnp.float32)
    w3t = params["w3"].T.astype(jnp.float32)                  # (Nc, Ctot)
    b1 = params["b1"].reshape(feat, 1).astype(jnp.float32)
    b2 = params["b2"].reshape(cb, 1).astype(jnp.float32)
    b3 = params["b3"].reshape(nc, 1).astype(jnp.float32)

    L = ips * HW
    buf_len = ips * (HW + _PAD) + _PAD

    kernel = partial(_fused_kernel, H=H, W=W, ips=ips,
                     Cin=Cin, Feat=feat, Cb=cb, Nc=nc)

    out_flat = pl.pallas_call(
        kernel,
        out_shape=jax.ShapeDtypeStruct((N, nc, HW), jnp.float32),
        grid=(N // ips,),
        in_specs=[
            pl.BlockSpec((ips, Cin, HW), lambda g: (g, 0, 0)),
            pl.BlockSpec((feat, 9 * Cin), lambda g: (0, 0)),
            pl.BlockSpec((feat, 1), lambda g: (0, 0)),
            pl.BlockSpec((cb, 9 * feat), lambda g: (0, 0)),
            pl.BlockSpec((cb, 1), lambda g: (0, 0)),
            pl.BlockSpec((nc, ctot), lambda g: (0, 0)),
            pl.BlockSpec((nc, 1), lambda g: (0, 0)),
        ],
        out_specs=pl.BlockSpec((ips, nc, HW), lambda g: (g, 0, 0)),
        scratch_shapes=[
            pltpu.VMEM((ctot, buf_len), jnp.float32),   # x/out/features line buffer
            pltpu.VMEM((9 * Cin, L), jnp.float32),      # stacked taps, conv1
            pltpu.VMEM((9 * feat, L), jnp.float32),     # stacked taps, conv2
        ],
        compiler_params=pltpu.CompilerParams(
            dimension_semantics=("parallel",)),
    )(x, w1s, b1, w2s, b2, w3t, b3)

    return out_flat.reshape(N, nc, H, W)


# -----------------------------------------------------------------------------
# Deterministic parameter init
# -----------------------------------------------------------------------------
def init_params(key, cin=3, feat=8, backbone_out=16, num_classes=2):
    k1, k2, k3 = jax.random.split(key, 3)
    scale = 0.1
    return {
        "w1": scale * jax.random.normal(k1, (3, 3, cin, feat), jnp.float32),
        "b1": jnp.zeros((feat,), jnp.float32),
        "w2": scale * jax.random.normal(k2, (3, 3, feat, backbone_out), jnp.float32),
        "b2": jnp.zeros((backbone_out,), jnp.float32),
        "w3": scale * jax.random.normal(
            k3, (cin + backbone_out + feat, num_classes), jnp.float32),
        "b3": jnp.zeros((num_classes,), jnp.float32),
    }


def _reference_forward(x_nchw, params):
    """Pure-JAX reference (lax.conv) used only for the correctness check."""
    dn = ("NCHW", "HWIO", "NCHW")

    def conv_relu(x, w, b):
        y = lax.conv_general_dilated(x, w, (1, 1), "SAME", dimension_numbers=dn)
        return jax.nn.relu(y + b[None, :, None, None])

    feats = conv_relu(x_nchw, params["w1"], params["b1"])
    out = conv_relu(feats, params["w2"], params["b2"])
    fused = jnp.concatenate([x_nchw, out, feats], axis=1)
    logits = (jnp.einsum("nchw,ck->nkhw", fused, params["w3"])
              + params["b3"][None, :, None, None])
    return logits


if __name__ == "__main__":
    key = jax.random.PRNGKey(0)
    kx, kp = jax.random.split(key)

    # NCHW input, matching the PyTorch convention: batch=2, C=3, H=W=16.
    inputs = jax.random.normal(kx, (2, 3, 16, 16), jnp.float32)
    params = init_params(kp)

    result = jax.jit(core_human_seg_forward)(inputs, params)
    jax.block_until_ready(result)

    assert result.shape == (2, 2, 16, 16), result.shape
    assert result.dtype == jnp.float32

    # Correctness vs pure-JAX reference (default MXU precision on f32 inputs,
    # so allow a small bf16-pass mismatch budget).
    ref = _reference_forward(inputs, params)
    max_err = float(jnp.max(jnp.abs(result - ref)))
    assert max_err < 2e-2, f"max abs err vs reference: {max_err}"

    print("KERNEL_OK")
</pallas_src>

<mosaic_0001>
module attributes {stable_mosaic.version = 11 : i64} {
  func.func @_fused_kernel(%arg0: i32, %arg1: memref<1x3x256xf32, #tpu.memory_space<vmem>>, %arg2: memref<8x27xf32, #tpu.memory_space<vmem>>, %arg3: memref<8x1xf32, #tpu.memory_space<vmem>>, %arg4: memref<16x72xf32, #tpu.memory_space<vmem>>, %arg5: memref<16x1xf32, #tpu.memory_space<vmem>>, %arg6: memref<2x27xf32, #tpu.memory_space<vmem>>, %arg7: memref<2x1xf32, #tpu.memory_space<vmem>>, %arg8: memref<1x2x256xf32, #tpu.memory_space<vmem>>, %arg9: memref<27x512xf32, #tpu.memory_space<vmem>>, %arg10: memref<27x256xf32, #tpu.memory_space<vmem>>, %arg11: memref<72x256xf32, #tpu.memory_space<vmem>>) attributes {dimension_semantics = [#tpu.dimension_semantics<parallel>], iteration_bounds = array<i64: 2>, scalar_prefetch = 0 : i64, scratch_operands = 3 : i64, tpu.core_type = #tpu.core_type<tc>, window_params = [{transform_indices = @transform_0, window_bounds = array<i64: 1, 3, 256>}, {pipeline_mode = #tpu.pipeline_mode<synchronous>, transform_indices = @transform_1, window_bounds = array<i64: 8, 27>}, {pipeline_mode = #tpu.pipeline_mode<synchronous>, transform_indices = @transform_2, window_bounds = array<i64: 8, 1>}, {pipeline_mode = #tpu.pipeline_mode<synchronous>, transform_indices = @transform_3, window_bounds = array<i64: 16, 72>}, {pipeline_mode = #tpu.pipeline_mode<synchronous>, transform_indices = @transform_4, window_bounds = array<i64: 16, 1>}, {pipeline_mode = #tpu.pipeline_mode<synchronous>, transform_indices = @transform_5, window_bounds = array<i64: 2, 27>}, {pipeline_mode = #tpu.pipeline_mode<synchronous>, transform_indices = @transform_6, window_bounds = array<i64: 2, 1>}, {transform_indices = @transform_7, window_bounds = array<i64: 1, 2, 256>}]} {
    %0 = tpu.iota {dimensions = array<i32: 1>} : vector<1x256xi32>
    %c16_i32 = arith.constant 16 : i32
    %c0_i32 = arith.constant 0 : i32
    %1 = arith.cmpi eq, %c16_i32, %c0_i32 : i32
    %c1_i32 = arith.constant 1 : i32
    %2 = arith.select %1, %c1_i32, %c16_i32 : i32
    %3 = vector.broadcast %2 : i32 to vector<1x256xi32>
    %4 = arith.remsi %0, %3 : vector<1x256xi32>
    %c0_i32_0 = arith.constant 0 : i32
    %5 = vector.broadcast %c0_i32_0 : i32 to vector<1x256xi32>
    %6 = arith.cmpi ne, %4, %5 : vector<1x256xi32>
    %c0_i32_1 = arith.constant 0 : i32
    %7 = vector.broadcast %c0_i32_1 : i32 to vector<1x256xi32>
    %8 = arith.cmpi slt, %4, %7 : vector<1x256xi32>
    %c0_i32_2 = arith.constant 0 : i32
    %9 = arith.cmpi slt, %2, %c0_i32_2 : i32
    %10 = vector.broadcast %9 : i1 to vector<1x256xi1>
    %11 = vector.broadcast %10 : vector<1x256xi1> to vector<1x256xi1>
    %12 = arith.xori %8, %11 : vector<1x256xi1>
    %13 = arith.andi %12, %6 : vector<1x256xi1>
    %14 = vector.broadcast %2 : i32 to vector<1x256xi32>
    %15 = arith.addi %4, %14 : vector<1x256xi32>
    %16 = arith.select %13, %15, %4 : vector<1x256xi1>, vector<1x256xi32>
    %c1_i32_3 = arith.constant 1 : i32
    %17 = vector.broadcast %c1_i32_3 : i32 to vector<1x256xi32>
    %18 = arith.cmpi sge, %16, %17 : vector<1x256xi32>
    %19 = arith.extui %18 : vector<1x256xi1> to vector<1x256xi32>
    %20 = arith.sitofp %19 : vector<1x256xi32> to vector<1x256xf32>
    %c14_i32 = arith.constant 14 : i32
    %21 = vector.broadcast %c14_i32 : i32 to vector<1x256xi32>
    %22 = arith.cmpi sle, %16, %21 : vector<1x256xi32>
    %23 = arith.extui %22 : vector<1x256xi1> to vector<1x256xi32>
    %24 = arith.sitofp %23 : vector<1x256xi32> to vector<1x256xf32>
    %cst = arith.constant 0.000000e+00 : f32
    %25 = vector.broadcast %cst : f32 to vector<3x128xf32>
    %cst_4 = arith.constant 0.000000e+00 : f32
    %26 = vector.broadcast %cst_4 : f32 to vector<8x128xf32>
    %c0 = arith.constant 0 : index
    %c0_5 = arith.constant 0 : index
    %27 = vector.load %arg9[%c0, %c0_5] : memref<27x512xf32, #tpu.memory_space<vmem>>, vector<3x128xf32>
    tpu.vector_store %arg9[%c0, %c0_5], %25 {strides = array<i32>} : memref<27x512xf32, #tpu.memory_space<vmem>>, vector<3x128xf32>,
    %c19 = arith.constant 19 : index
    %c0_6 = arith.constant 0 : index
    %28 = vector.load %arg9[%c19, %c0_6] : memref<27x512xf32, #tpu.memory_space<vmem>>, vector<8x128xf32>
    tpu.vector_store %arg9[%c19, %c0_6], %26 {strides = array<i32>} : memref<27x512xf32, #tpu.memory_space<vmem>>, vector<8x128xf32>,
    %c0_7 = arith.constant 0 : index
    %c384 = arith.constant 384 : index
    %29 = vector.load %arg9[%c0_7, %c384] : memref<27x512xf32, #tpu.memory_space<vmem>>, vector<3x128xf32>
    tpu.vector_store %arg9[%c0_7, %c384], %25 {strides = array<i32>} : memref<27x512xf32, #tpu.memory_space<vmem>>, vector<3x128xf32>,
    %c19_8 = arith.constant 19 : index
    %c384_9 = arith.constant 384 : index
    %30 = vector.load %arg9[%c19_8, %c384_9] : memref<27x512xf32, #tpu.memory_space<vmem>>, vector<8x128xf32>
    tpu.vector_store %arg9[%c19_8, %c384_9], %26 {strides = array<i32>} : memref<27x512xf32, #tpu.memory_space<vmem>>, vector<8x128xf32>,
    %c0_10 = arith.constant 0 : index
    %c0_11 = arith.constant 0 : index
    %c0_12 = arith.constant 0 : index
    %31 = vector.load %arg1[%c0_10, %c0_11, %c0_12] : memref<1x3x256xf32, #tpu.memory_space<vmem>>, vector<1x3x256xf32>
    %32 = vector.shape_cast %31 : vector<1x3x256xf32> to vector<3x256xf32>
    %c0_13 = arith.constant 0 : index
    %c128 = arith.constant 128 : index
    %33 = vector.load %arg9[%c0_13, %c128] : memref<27x512xf32, #tpu.memory_space<vmem>>, vector<3x256xf32>
    tpu.vector_store %arg9[%c0_13, %c128], %32 {strides = array<i32>} : memref<27x512xf32, #tpu.memory_space<vmem>>, vector<3x256xf32>,
    %c0_14 = arith.constant 0 : index
    %c111 = arith.constant 111 : index
    %34 = vector.load %arg9[%c0_14, %c111] : memref<27x512xf32, #tpu.memory_space<vmem>>, vector<3x256xf32>
    %35 = vector.broadcast %20 : vector<1x256xf32> to vector<3x256xf32>
    %36 = arith.mulf %34, %35 : vector<3x256xf32>
    %c0_15 = arith.constant 0 : index
    %c0_16 = arith.constant 0 : index
    %37 = vector.load %arg10[%c0_15, %c0_16] : memref<27x256xf32, #tpu.memory_space<vmem>>, vector<3x256xf32>
    tpu.vector_store %arg10[%c0_15, %c0_16], %36 {strides = array<i32>} : memref<27x256xf32, #tpu.memory_space<vmem>>, vector<3x256xf32>,
    %c0_17 = arith.constant 0 : index
    %c112 = arith.constant 112 : index
    %38 = vector.load %arg9[%c0_17, %c112] : memref<27x512xf32, #tpu.memory_space<vmem>>, vector<3x256xf32>
    %c3 = arith.constant 3 : index
    %c0_18 = arith.constant 0 : index
    %39 = vector.load %arg10[%c3, %c0_18] : memref<27x256xf32, #tpu.memory_space<vmem>>, vector<3x256xf32>
    tpu.vector_store %arg10[%c3, %c0_18], %38 {strides = array<i32>} : memref<27x256xf32, #tpu.memory_space<vmem>>, vector<3x256xf32>,
    %c0_19 = arith.constant 0 : index
    %c113 = arith.constant 113 : index
    %40 = vector.load %arg9[%c0_19, %c113] : memref<27x512xf32, #tpu.memory_space<vmem>>, vector<3x256xf32>
    %41 = vector.broadcast %24 : vector<1x256xf32> to vector<3x256xf32>
    %42 = arith.mulf %40, %41 : vector<3x256xf32>
    %c6 = arith.constant 6 : index
    %c0_20 = arith.constant 0 : index
    %43 = vector.load %arg10[%c6, %c0_20] : memref<27x256xf32, #tpu.memory_space<vmem>>, vector<3x256xf32>
    tpu.vector_store %arg10[%c6, %c0_20], %42 {strides = array<i32>} : memref<27x256xf32, #tpu.memory_space<vmem>>, vector<3x256xf32>,
    %c0_21 = arith.constant 0 : index
    %c127 = arith.constant 127 : index
    %44 = vector.load %arg9[%c0_21, %c127] : memref<27x512xf32, #tpu.memory_space<vmem>>, vector<3x256xf32>
    %45 = vector.broadcast %20 : vector<1x256xf32> to vector<3x256xf32>
    %46 = arith.mulf %44, %45 : vector<3x256xf32>
    %c9 = arith.constant 9 : index
    %c0_22 = arith.constant 0 : index
    %47 = vector.load %arg10[%c9, %c0_22] : memref<27x256xf32, #tpu.memory_space<vmem>>, vector<3x256xf32>
    tpu.vector_store %arg10[%c9, %c0_22], %46 {strides = array<i32>} : memref<27x256xf32, #tpu.memory_space<vmem>>, vector<3x256xf32>,
    %c0_23 = arith.constant 0 : index
    %c128_24 = arith.constant 128 : index
    %48 = vector.load %arg9[%c0_23, %c128_24] : memref<27x512xf32, #tpu.memory_space<vmem>>, vector<3x256xf32>
    %c12 = arith.constant 12 : index
    %c0_25 = arith.constant 0 : index
    %49 = vector.load %arg10[%c12, %c0_25] : memref<27x256xf32, #tpu.memory_space<vmem>>, vector<3x256xf32>
    tpu.vector_store %arg10[%c12, %c0_25], %48 {strides = array<i32>} : memref<27x256xf32, #tpu.memory_space<vmem>>, vector<3x256xf32>,
    %c0_26 = arith.constant 0 : index
    %c129 = arith.constant 129 : index
    %50 = vector.load %arg9[%c0_26, %c129] : memref<27x512xf32, #tpu.memory_space<vmem>>, vector<3x256xf32>
    %51 = vector.broadcast %24 : vector<1x256xf32> to vector<3x256xf32>
    %52 = arith.mulf %50, %51 : vector<3x256xf32>
    %c15 = arith.constant 15 : index
    %c0_27 = arith.constant 0 : index
    %53 = vector.load %arg10[%c15, %c0_27] : memref<27x256xf32, #tpu.memory_space<vmem>>, vector<3x256xf32>
    tpu.vector_store %arg10[%c15, %c0_27], %52 {strides = array<i32>} : memref<27x256xf32, #tpu.memory_space<vmem>>, vector<3x256xf32>,
    %c0_28 = arith.constant 0 : index
    %c143 = arith.constant 143 : index
    %54 = vector.load %arg9[%c0_28, %c143] : memref<27x512xf32, #tpu.memory_space<vmem>>, vector<3x256xf32>
    %55 = vector.broadcast %20 : vector<1x256xf32> to vector<3x256xf32>
    %56 = arith.mulf %54, %55 : vector<3x256xf32>
    %c18 = arith.constant 18 : index
    %c0_29 = arith.constant 0 : index
    %57 = vector.load %arg10[%c18, %c0_29] : memref<27x256xf32, #tpu.memory_space<vmem>>, vector<3x256xf32>
    tpu.vector_store %arg10[%c18, %c0_29], %56 {strides = array<i32>} : memref<27x256xf32, #tpu.memory_space<vmem>>, vector<3x256xf32>,
    %c0_30 = arith.constant 0 : index
    %c144 = arith.constant 144 : index
    %58 = vector.load %arg9[%c0_30, %c144] : memref<27x512xf32, #tpu.memory_space<vmem>>, vector<3x256xf32>
    %c21 = arith.constant 21 : index
    %c0_31 = arith.constant 0 : index
    %59 = vector.load %arg10[%c21, %c0_31] : memref<27x256xf32, #tpu.memory_space<vmem>>, vector<3x256xf32>
    tpu.vector_store %arg10[%c21, %c0_31], %58 {strides = array<i32>} : memref<27x256xf32, #tpu.memory_space<vmem>>, vector<3x256xf32>,
    %c0_32 = arith.constant 0 : index
    %c145 = arith.constant 145 : index
    %60 = vector.load %arg9[%c0_32, %c145] : memref<27x512xf32, #tpu.memory_space<vmem>>, vector<3x256xf32>
    %61 = vector.broadcast %24 : vector<1x256xf32> to vector<3x256xf32>
    %62 = arith.mulf %60, %61 : vector<3x256xf32>
    %c24 = arith.constant 24 : index
    %c0_33 = arith.constant 0 : index
    %63 = vector.load %arg10[%c24, %c0_33] : memref<27x256xf32, #tpu.memory_space<vmem>>, vector<3x256xf32>
    tpu.vector_store %arg10[%c24, %c0_33], %62 {strides = array<i32>} : memref<27x256xf32, #tpu.memory_space<vmem>>, vector<3x256xf32>,
    %c0_34 = arith.constant 0 : index
    %c0_35 = arith.constant 0 : index
    %64 = vector.load %arg2[%c0_34, %c0_35] : memref<8x27xf32, #tpu.memory_space<vmem>>, vector<8x27xf32>
    %c0_36 = arith.constant 0 : index
    %c0_37 = arith.constant 0 : index
    %65 = vector.load %arg10[%c0_36, %c0_37] : memref<27x256xf32, #tpu.memory_space<vmem>>, vector<27x256xf32>
    %cst_38 = arith.constant dense<0.000000e+00> : vector<8x256xf32>
    %66 = tpu.matmul %64, %65, %cst_38 {dimension_numbers = #tpu.dot_dimension_numbers<[1], [0], [0], [1], [0, 0, 1, 1], [], []>} : vector<8x27xf32>, vector<27x256xf32>, vector<8x256xf32> -> vector<8x256xf32>
    %c0_39 = arith.constant 0 : index
    %c0_40 = arith.constant 0 : index
    %67 = vector.load %arg3[%c0_39, %c0_40] : memref<8x1xf32, #tpu.memory_space<vmem>>, vector<8x1xf32>
    %68 = vector.broadcast %67 : vector<8x1xf32> to vector<8x256xf32>
    %69 = arith.addf %66, %68 : vector<8x256xf32>
    %cst_41 = arith.constant 0.000000e+00 : f32
    %70 = vector.broadcast %cst_41 : f32 to vector<8x256xf32>
    %71 = arith.maximumf %69, %70 : vector<8x256xf32>
    %c19_42 = arith.constant 19 : index
    %c128_43 = arith.constant 128 : index
    %72 = vector.load %arg9[%c19_42, %c128_43] : memref<27x512xf32, #tpu.memory_space<vmem>>, vector<8x256xf32>
    tpu.vector_store %arg9[%c19_42, %c128_43], %71 {strides = array<i32>} : memref<27x512xf32, #tpu.memory_space<vmem>>, vector<8x256xf32>,
    %c19_44 = arith.constant 19 : index
    %c111_45 = arith.constant 111 : index
    %73 = vector.load %arg9[%c19_44, %c111_45] : memref<27x512xf32, #tpu.memory_space<vmem>>, vector<8x256xf32>
    %74 = vector.broadcast %20 : vector<1x256xf32> to vector<8x256xf32>
    %75 = arith.mulf %73, %74 : vector<8x256xf32>
    %c0_46 = arith.constant 0 : index
    %c0_47 = arith.constant 0 : index
    %76 = vector.load %arg11[%c0_46, %c0_47] : memref<72x256xf32, #tpu.memory_space<vmem>>, vector<8x256xf32>
    tpu.vector_store %arg11[%c0_46, %c0_47], %75 {strides = array<i32>} : memref<72x256xf32, #tpu.memory_space<vmem>>, vector<8x256xf32>,
    %c19_48 = arith.constant 19 : index
    %c112_49 = arith.constant 112 : index
    %77 = vector.load %arg9[%c19_48, %c112_49] : memref<27x512xf32, #tpu.memory_space<vmem>>, vector<8x256xf32>
    %c8 = arith.constant 8 : index
    %c0_50 = arith.constant 0 : index
    %78 = vector.load %arg11[%c8, %c0_50] : memref<72x256xf32, #tpu.memory_space<vmem>>, vector<8x256xf32>
    tpu.vector_store %arg11[%c8, %c0_50], %77 {strides = array<i32>} : memref<72x256xf32, #tpu.memory_space<vmem>>, vector<8x256xf32>,
    %c19_51 = arith.constant 19 : index
    %c113_52 = arith.constant 113 : index
    %79 = vector.load %arg9[%c19_51, %c113_52] : memref<27x512xf32, #tpu.memory_space<vmem>>, vector<8x256xf32>
    %80 = vector.broadcast %24 : vector<1x256xf32> to vector<8x256xf32>
    %81 = arith.mulf %79, %80 : vector<8x256xf32>
    %c16 = arith.constant 16 : index
    %c0_53 = arith.constant 0 : index
    %82 = vector.load %arg11[%c16, %c0_53] : memref<72x256xf32, #tpu.memory_space<vmem>>, vector<8x256xf32>
    tpu.vector_store %arg11[%c16, %c0_53], %81 {strides = array<i32>} : memref<72x256xf32, #tpu.memory_space<vmem>>, vector<8x256xf32>,
    %c19_54 = arith.constant 19 : index
    %c127_55 = arith.constant 127 : index
    %83 = vector.load %arg9[%c19_54, %c127_55] : memref<27x512xf32, #tpu.memory_space<vmem>>, vector<8x256xf32>
    %84 = vector.broadcast %20 : vector<1x256xf32> to vector<8x256xf32>
    %85 = arith.mulf %83, %84 : vector<8x256xf32>
    %c24_56 = arith.constant 24 : index
    %c0_57 = arith.constant 0 : index
    %86 = vector.load %arg11[%c24_56, %c0_57] : memref<72x256xf32, #tpu.memory_space<vmem>>, vector<8x256xf32>
    tpu.vector_store %arg11[%c24_56, %c0_57], %85 {strides = array<i32>} : memref<72x256xf32, #tpu.memory_space<vmem>>, vector<8x256xf32>,
    %c19_58 = arith.constant 19 : index
    %c128_59 = arith.constant 128 : index
    %87 = vector.load %arg9[%c19_58, %c128_59] : memref<27x512xf32, #tpu.memory_space<vmem>>, vector<8x256xf32>
    %c32 = arith.constant 32 : index
    %c0_60 = arith.constant 0 : index
    %88 = vector.load %arg11[%c32, %c0_60] : memref<72x256xf32, #tpu.memory_space<vmem>>, vector<8x256xf32>
    tpu.vector_store %arg11[%c32, %c0_60], %87 {strides = array<i32>} : memref<72x256xf32, #tpu.memory_space<vmem>>, vector<8x256xf32>,
    %c19_61 = arith.constant 19 : index
    %c129_62 = arith.constant 129 : index
    %89 = vector.load %arg9[%c19_61, %c129_62] : memref<27x512xf32, #tpu.memory_space<vmem>>, vector<8x256xf32>
    %90 = vector.broadcast %24 : vector<1x256xf32> to vector<8x256xf32>
    %91 = arith.mulf %89, %90 : vector<8x256xf32>
    %c40 = arith.constant 40 : index
    %c0_63 = arith.constant 0 : index
    %92 = vector.load %arg11[%c40, %c0_63] : memref<72x256xf32, #tpu.memory_space<vmem>>, vector<8x256xf32>
    tpu.vector_store %arg11[%c40, %c0_63], %91 {strides = array<i32>} : memref<72x256xf32, #tpu.memory_space<vmem>>, vector<8x256xf32>,
    %c19_64 = arith.constant 19 : index
    %c143_65 = arith.constant 143 : index
    %93 = vector.load %arg9[%c19_64, %c143_65] : memref<27x512xf32, #tpu.memory_space<vmem>>, vector<8x256xf32>
    %94 = vector.broadcast %20 : vector<1x256xf32> to vector<8x256xf32>
    %95 = arith.mulf %93, %94 : vector<8x256xf32>
    %c48 = arith.constant 48 : index
    %c0_66 = arith.constant 0 : index
    %96 = vector.load %arg11[%c48, %c0_66] : memref<72x256xf32, #tpu.memory_space<vmem>>, vector<8x256xf32>
    tpu.vector_store %arg11[%c48, %c0_66], %95 {strides = array<i32>} : memref<72x256xf32, #tpu.memory_space<vmem>>, vector<8x256xf32>,
    %c19_67 = arith.constant 19 : index
    %c144_68 = arith.constant 144 : index
    %97 = vector.load %arg9[%c19_67, %c144_68] : memref<27x512xf32, #tpu.memory_space<vmem>>, vector<8x256xf32>
    %c56 = arith.constant 56 : index
    %c0_69 = arith.constant 0 : index
    %98 = vector.load %arg11[%c56, %c0_69] : memref<72x256xf32, #tpu.memory_space<vmem>>, vector<8x256xf32>
    tpu.vector_store %arg11[%c56, %c0_69], %97 {strides = array<i32>} : memref<72x256xf32, #tpu.memory_space<vmem>>, vector<8x256xf32>,
    %c19_70 = arith.constant 19 : index
    %c145_71 = arith.constant 145 : index
    %99 = vector.load %arg9[%c19_70, %c145_71] : memref<27x512xf32, #tpu.memory_space<vmem>>, vector<8x256xf32>
    %100 = vector.broadcast %24 : vector<1x256xf32> to vector<8x256xf32>
    %101 = arith.mulf %99, %100 : vector<8x256xf32>
    %c64 = arith.constant 64 : index
    %c0_72 = arith.constant 0 : index
    %102 = vector.load %arg11[%c64, %c0_72] : memref<72x256xf32, #tpu.memory_space<vmem>>, vector<8x256xf32>
    tpu.vector_store %arg11[%c64, %c0_72], %101 {strides = array<i32>} : memref<72x256xf32, #tpu.memory_space<vmem>>, vector<8x256xf32>,
    %c0_73 = arith.constant 0 : index
    %c0_74 = arith.constant 0 : index
    %103 = vector.load %arg4[%c0_73, %c0_74] : memref<16x72xf32, #tpu.memory_space<vmem>>, vector<16x72xf32>
    %c0_75 = arith.constant 0 : index
    %c0_76 = arith.constant 0 : index
    %104 = vector.load %arg11[%c0_75, %c0_76] : memref<72x256xf32, #tpu.memory_space<vmem>>, vector<72x256xf32>
    %cst_77 = arith.constant dense<0.000000e+00> : vector<16x256xf32>
    %105 = tpu.matmul %103, %104, %cst_77 {dimension_numbers = #tpu.dot_dimension_numbers<[1], [0], [0], [1], [0, 0, 1, 1], [], []>} : vector<16x72xf32>, vector<72x256xf32>, vector<16x256xf32> -> vector<16x256xf32>
    %c0_78 = arith.constant 0 : index
    %c0_79 = arith.constant 0 : index
    %106 = vector.load %arg5[%c0_78, %c0_79] : memref<16x1xf32, #tpu.memory_space<vmem>>, vector<16x1xf32>
    %107 = vector.broadcast %106 : vector<16x1xf32> to vector<16x256xf32>
    %108 = arith.addf %105, %107 : vector<16x256xf32>
    %cst_80 = arith.constant 0.000000e+00 : f32
    %109 = vector.broadcast %cst_80 : f32 to vector<16x256xf32>
    %110 = arith.maximumf %108, %109 : vector<16x256xf32>
    %c3_81 = arith.constant 3 : index
    %c128_82 = arith.constant 128 : index
    %111 = vector.load %arg9[%c3_81, %c128_82] : memref<27x512xf32, #tpu.memory_space<vmem>>, vector<16x256xf32>
    tpu.vector_store %arg9[%c3_81, %c128_82], %110 {strides = array<i32>} : memref<27x512xf32, #tpu.memory_space<vmem>>, vector<16x256xf32>,
    %c0_83 = arith.constant 0 : index
    %c0_84 = arith.constant 0 : index
    %112 = vector.load %arg6[%c0_83, %c0_84] : memref<2x27xf32, #tpu.memory_space<vmem>>, vector<2x27xf32>
    %c0_85 = arith.constant 0 : index
    %c128_86 = arith.constant 128 : index
    %113 = vector.load %arg9[%c0_85, %c128_86] : memref<27x512xf32, #tpu.memory_space<vmem>>, vector<27x256xf32>
    %cst_87 = arith.constant dense<0.000000e+00> : vector<2x256xf32>
    %114 = tpu.matmul %112, %113, %cst_87 {dimension_numbers = #tpu.dot_dimension_numbers<[1], [0], [0], [1], [0, 0, 1, 1], [], []>} : vector<2x27xf32>, vector<27x256xf32>, vector<2x256xf32> -> vector<2x256xf32>
    %c0_88 = arith.constant 0 : index
    %c0_89 = arith.constant 0 : index
    %115 = vector.load %arg7[%c0_88, %c0_89] : memref<2x1xf32, #tpu.memory_space<vmem>>, vector<2x1xf32>
    %116 = vector.broadcast %115 : vector<2x1xf32> to vector<2x256xf32>
    %117 = arith.addf %114, %116 : vector<2x256xf32>
    %c0_90 = arith.constant 0 : index
    %c0_91 = arith.constant 0 : index
    %c0_92 = arith.constant 0 : index
    %118 = vector.load %arg8[%c0_90, %c0_91, %c0_92] : memref<1x2x256xf32, #tpu.memory_space<vmem>>, vector<1x2x256xf32>
    %119 = vector.shape_cast %118 : vector<1x2x256xf32> to vector<2x256xf32>
    %120 = vector.shape_cast %117 : vector<2x256xf32> to vector<1x2x256xf32>
    tpu.vector_store %arg8[%c0_90, %c0_91, %c0_92], %120 {strides = array<i32>} : memref<1x2x256xf32, #tpu.memory_space<vmem>>, vector<1x2x256xf32>,
    return
  }
  func.func @transform_0(%arg0: i32) -> (i32, i32, i32) {
    %c0_i32 = arith.constant 0 : i32
    %c0_i32_0 = arith.constant 0 : i32
    %c0_i32_1 = arith.constant 0 : i32
    return %arg0, %c0_i32, %c0_i32_0 : i32, i32, i32
  }
  func.func @transform_1(%arg0: i32) -> (i32, i32) {
    %c0_i32 = arith.constant 0 : i32
    %c0_i32_0 = arith.constant 0 : i32
    %c0_i32_1 = arith.constant 0 : i32
    return %c0_i32, %c0_i32_0 : i32, i32
  }
  func.func @transform_2(%arg0: i32) -> (i32, i32) {
    %c0_i32 = arith.constant 0 : i32
    %c0_i32_0 = arith.constant 0 : i32
    %c0_i32_1 = arith.constant 0 : i32
    return %c0_i32, %c0_i32_0 : i32, i32
  }
  func.func @transform_3(%arg0: i32) -> (i32, i32) {
    %c0_i32 = arith.constant 0 : i32
    %c0_i32_0 = arith.constant 0 : i32
    %c0_i32_1 = arith.constant 0 : i32
    return %c0_i32, %c0_i32_0 : i32, i32
  }
  func.func @transform_4(%arg0: i32) -> (i32, i32) {
    %c0_i32 = arith.constant 0 : i32
    %c0_i32_0 = arith.constant 0 : i32
    %c0_i32_1 = arith.constant 0 : i32
    return %c0_i32, %c0_i32_0 : i32, i32
  }
  func.func @transform_5(%arg0: i32) -> (i32, i32) {
    %c0_i32 = arith.constant 0 : i32
    %c0_i32_0 = arith.constant 0 : i32
    %c0_i32_1 = arith.constant 0 : i32
    return %c0_i32, %c0_i32_0 : i32, i32
  }
  func.func @transform_6(%arg0: i32) -> (i32, i32) {
    %c0_i32 = arith.constant 0 : i32
    %c0_i32_0 = arith.constant 0 : i32
    %c0_i32_1 = arith.constant 0 : i32
    return %c0_i32, %c0_i32_0 : i32, i32
  }
  func.func @transform_7(%arg0: i32) -> (i32, i32, i32) {
    %c0_i32 = arith.constant 0 : i32
    %c0_i32_0 = arith.constant 0 : i32
    %c0_i32_1 = arith.constant 0 : i32
    return %arg0, %c0_i32, %c0_i32_0 : i32, i32, i32
  }
}

</mosaic_0001>

<bundles_post_ra>
// kernel: core_human_seg_forward.1
= control target key start
LH: loop header
LB: loop body
LE: loop exit
PB: predicated region body
PF: predicated region fallthrough
CT: control target
= control target key end

     0   :  { %s1451_s24 = smov 0   ;;  %s1738_s0 = inlined_call_operand.vmem [shape: f32[2,3,256], index: 0, kind: input, shape index: {}]   ;;  %s1739_s1 = inlined_call_operand.vmem [shape: f32[8,27], index: 1, kind: input, shape index: {}]   ;;  %s1740_s2 = inlined_call_operand.vmem [shape: f32[8,1], index: 2, kind: input, shape index: {}]   ;;  %s1741_s3 = inlined_call_operand.vmem [shape: f32[16,72], index: 3, kind: input, shape index: {}]   ;;  %s1742_s4 = inlined_call_operand.vmem [shape: f32[16,1], index: 4, kind: input, shape index: {}]   ;;  %s1743_s5 = inlined_call_operand.vmem [shape: f32[2,27], index: 5, kind: input, shape index: {}]   ;;  %s1744_s6 = inlined_call_operand.vmem [shape: f32[2,1], index: 6, kind: input, shape index: {}]   ;;  %s1745_s7 = inlined_call_operand.vmem [shape: f32[2,2,256], index: 7, kind: output, shape index: {}]  }
   0x1 LB: > { %s1316_s25 = sadd.s32 4294967295, %s1399_s24   ;;  %p1320_p0 = scmp.ge.s32.totalorder %s1399_s24, 1  ;;  %s1399_s24 = sphi %s1451_s24, %s17_s24  }
   0x2   : > { %p237_p1 = scmp.lt.s32.totalorder %s1399_s24, 3 }
   0x4   : > { %p238_p2 = pnand %p1320_p0, %p237_p1 }
   0x5   : > { %p269_p3 = scmp.lt.s32.totalorder (!%p238_p2), %s1316_s25, 1  ;;  %s1402_s30 = smov (!%p238_p2), 17  }
   0x6   : > { %241 = sbr.rel (%p238_p2) target bundleno = 1087 (0x43f), region = 48  ;;  %s1403_s8 = smov (!%p238_p2), 1  }
   0x7   : > { %s1404_s9 = smov (!%p238_p2), 15   ;;  %s1405_s10 = smov (!%p238_p2), 113  }
   0x8   : > { %s1406_s11 = smov (!%p238_p2), 127   ;;  %s1407_s12 = smov (!%p238_p2), 111  }
   0x9   : > { %s1408_s13 = smov (!%p238_p2), 112   ;;  %s1409_s14 = smov (!%p238_p2), 16  }
   0xb   : > { %v279_v0 = vlaneseq  ;;  %v1401_v1 = vmov 0.0   ;;  %s1747_s25 = smov (!%p269_p3, %s1316_s25), 1  ;;  %v1410_v22 = vmov 0   ;;  %vm356_vm4 = vcmask 138240  }
   0xc   : > { %318 = vst [vmem:[#allocation2 + $0x8] sm:$0x7] %v1401_v1  ;;  %319 = vst [vmem:[#allocation2] sm:$0xf8] %v1401_v1  ;;  %674 = vmatprep.mubr.f32.mxu0 %v1401_v1  ;;  %1115 = vmatprep.mubr.f32.mxu1 %v1401_v1  ;;  %s1340_s26 = sshll.u32 %s1747_s25, 3  ;;  %vm339_vm5 = vcmask 908288  }
   0xd   : > { %320 = vst [vmem:[#allocation2 + $0x70] sm:$0x7] %v1401_v1  ;;  %321 = vst [vmem:[#allocation2 + $0x18] sm:$0x7] %v1401_v1  ;;  %v280_v2 = vand.u32 127, %v279_v0  ;;  %s273_s29 = scalar_lea.vmem %s1738_s0, %s1340_s26  ;;  %1390 = vset.pattern.permute.xlu0 %v1410_v22  ;;  %1391 = vset.pattern.permute.xlu1 %v1410_v22  ;;  %vm548_vm6 = vcmask 916480  }
   0xe   : > { %322 = vst [vmem:[#allocation2 + $0x68] sm:$0xf8] %v1401_v1  ;;  %323 = vst [vmem:[#allocation2 + $0x30] sm:$0x7] %v1401_v1  ;;  %v324_v10 = vld [vmem:[%s273_s29] sm:$0x77] }
   0xf   : > { %v281_v3 = vadd.s32 128, %v280_v2  ;;  %v286_v4 = vand.u32 15, %v280_v2  ;;  %328 = vst [vmem:[#allocation2 + $0x40] sm:$0x7] %v324_v10  ;;  %v326_v12 = vcombine.high %v324_v10, %v324_v10  ;;  %vm450_vm7 = vcmask 7168  }
  0x10   : > { %vm394_vm8 = vcmask 924672   ;;  %vm414_vm9 = vcmask 121856   ;;  %vm430_vm10 = vcmask 1039360   ;;  %vm711_vm11 = vcmask 1044480  }
  0x11   : > { %v293_v5 = vand.u32 15, %v281_v3  ;;  %vm312_vm0 = vcmp.le.s32.totalorder %v286_v4, 14  ;;  %vm306_vm1 = vcmp.ge.s32.totalorder %v286_v4, 1  ;;  %329 = vst [vmem:[#allocation2 + $0x50] sm:$0x7] %v326_v12  ;;  %vm603_vm12 = vcmask 1042432  }
  0x12   : > { %v1327_v6 = vsel %vm312_vm0, 1.0, %v1401_v1  ;;  %v1325_v8 = vsel %vm306_vm1, 1.0, %v1401_v1  ;;  %vm378_vm13 = vcmask 130048   ;;  %vm599_vm14 = vcmask 220160  }
  0x13   : > { %vm313_vm2 = vcmp.le.s32.totalorder %v293_v5, 14  ;;  %vm307_vm3 = vcmp.ge.s32.totalorder %v293_v5, 1  ;;  %v385_v37 = vld [vmem:[#allocation2 + $0x8] sm:$0x7]  ;;  %vm1044_vm15 = vcmask 588800  }
  0x14   : > { %v1328_v7 = vsel %vm313_vm2, 1.0, %v1401_v1  ;;  %v1326_v9 = vsel %vm307_vm3, 1.0, %v1401_v1  ;;  %v535_v15 = vld [vmem:[#allocation2 + $0x18] sm:$0x7]  ;;  %v423_v45 = vld [vmem:[#allocation2 + $0x8] sm:$0x7] }
  0x15   : > { %v1370_v11 = vpack.i.bf16 %v1328_v7, %v1327_v6  ;;  %v1365_v13 = vpack.i.bf16 %v1326_v9, %v1325_v8  ;;  %v541_v17 = vrot.slane %v535_v15, 3  ;;  %v557_v25 = vld [vmem:[#allocation2 + $0x18] sm:$0x7] }
  0x16   : > { %v533_v14 = vld [vmem:[#allocation2 + $0x40] sm:$0x7]  ;;  %v469_v3 = vld [vmem:[#allocation2 + $0x18] sm:$0x7] }
  0x17   : > { %1371 = vrot.lane.b32.xlu1 %v1370_v11, %s1402_s30  ;;  %1361 = vrot.lane.b32.xlu0 %v1370_v11, %s1403_s8  ;;  %v539_v16 = vrot.slane %v533_v14, 3  ;;  %v364_v19 = vld [vmem:[#allocation2 + $0x40] sm:$0x7]  ;;  %v503_v14 = vld [vmem:[#allocation2 + $0x18] sm:$0x7] }
  0x18   : > { %v534_v18 = vld [vmem:[#allocation2 + $0x50] sm:$0x7]  ;;  %v370_v21 = vrot.slane %v364_v19, 5  ;;  %v555_v26 = vld [vmem:[#allocation2 + $0x40] sm:$0x7] }
  0x19   : > { %v540_v20 = vrot.slane %v534_v18, 3  ;;  %v467_v27 = vld [vmem:[#allocation2 + $0x40] sm:$0x7]  ;;  %v332_v51 = vld [vmem:[#allocation2 + $0x50] sm:$0x7] }
  0x1a   : > { %v501_v36 = vld [vmem:[#allocation2 + $0x40] sm:$0x7]  ;;  %v556_v56 = vld [vmem:[#allocation2 + $0x50] sm:$0x7] }
  0x1b   : > { %1366 = vrot.lane.b32.xlu0 %v1365_v13, %s1404_s9  ;;  %1376 = vrot.lane.b32.xlu1 %v1370_v11, %s1405_s10  ;;  %v387_v58 = vld [vmem:[#allocation2 + $0x50] sm:$0x7]  ;;  %v331_v4 = vld [vmem:[#allocation2 + $0x40] sm:$0x7] }
  0x1c   : > { %v425_v6 = vld [vmem:[#allocation2 + $0x50] sm:$0x7] }
  0x1d   : > { %v468_v15 = vld [vmem:[#allocation2 + $0x50] sm:$0x7] }
  0x1f   : > { %1381 = vrot.lane.b32.xlu0 %v1365_v13, %s1406_s11  ;;  %1386 = vrot.lane.b32.xlu1 %v1365_v13, %s1407_s12 }
  0x23   : > { %542 = vrot.lane.b32.xlu1 %v539_v16, %s1408_s13  ;;  %546 = vrot.lane.b32.xlu0 %v541_v17, %s1408_s13 }
  0x27   : > { %544 = vrot.lane.b32.xlu1 %v540_v20, %s1408_s13  ;;  %374 = vrot.lane.b32.xlu0 %v370_v21, %s1409_s14  ;;  %v386_v21 = vld [vmem:[#allocation2 + $0x40] sm:$0x7] }
  0x89   : > { %v1372_v23 = vpop.permute.xlu1 %1371  ;;  %v1362_v24 = vpop.permute.xlu0 %1361 }
  0x8a   : > { %v1487_v28 = vunpack.i.h.bf16 %v1372_v23  ;;  %v1489_v29 = vunpack.i.l.bf16 %v1372_v23  ;;  %v1491_v30 = vunpack.i.l.bf16 %v1362_v24  ;;  %v1523_v60 = vunpack.i.h.bf16 %v1362_v24  ;;  %v502_v23 = vld [vmem:[#allocation2 + $0x50] sm:$0x7] }
  0x8c   : > { %v568_v31 = vmul.f32 %v1487_v28, %v557_v25  ;;  %v566_v32 = vmul.f32 %v1489_v29, %v555_v26  ;;  %v478_v33 = vmul.f32 %v1491_v30, %v467_v27  ;;  %v1518_v57 = vsel %vm356_vm4, %v1489_v29, %v1487_v28 }
  0x8d   : > { %v1367_v34 = vpop.permute.xlu0 %1366  ;;  %v1377_v35 = vpop.permute.xlu1 %1376  ;;  %v567_v0 = vmul.f32 %v1518_v57, %v556_v56  ;;  %v480_v9 = vmul.f32 %v1523_v60, %v469_v3  ;;  %v1546_v16 = vsel %vm450_vm7, %v1491_v30, %v1523_v60  ;;  %v975_v56 = vld [vmem:[#allocation2 + $0x68] sm:$0xf8] }
  0x8e   : > { %v1496_v38 = vunpack.i.l.bf16 %v1367_v34  ;;  %576 = vrot.lane.b32.xlu1 %v568_v31, %s1407_s12  ;;  %572 = vrot.lane.b32.xlu0 %v566_v32, %s1407_s12  ;;  %v1500_v39 = vunpack.i.l.bf16 %v1377_v35  ;;  %v484_v40 = vrot.slane %v478_v33, 1  ;;  %v1511_v53 = vunpack.i.h.bf16 %v1377_v35  ;;  %v424_v32 = vld [vmem:[#allocation2 + $0x40] sm:$0x7] }
  0x8f   : > { %v1539_v10 = vunpack.i.h.bf16 %v1367_v34  ;;  %v486_v17 = vrot.slane %v480_v9, 1  ;;  %v479_v20 = vmul.f32 %v1546_v16, %v468_v15  ;;  %v365_v34 = vld [vmem:[#allocation2 + $0x50] sm:$0x7] }
  0x90   : > { %v512_v41 = vmul.f32 %v1496_v38, %v501_v36  ;;  %v399_v42 = vmul.f32 %v1500_v39, %v385_v37  ;;  %v401_v2 = vmul.f32 %v1511_v53, %v387_v58  ;;  %v1555_v22 = vsel %vm394_vm8, %v1500_v39, %v1511_v53  ;;  %v978_v58 = vld [vmem:[#allocation2 + $0x30] sm:$0x7] }
  0x91   : > { %v1382_v43 = vpop.permute.xlu0 %1381  ;;  %v1387_v44 = vpop.permute.xlu1 %1386  ;;  %v514_v19 = vmul.f32 %v1539_v10, %v503_v14  ;;  %v1560_v24 = vsel %vm414_vm9, %v1496_v38, %v1539_v10  ;;  %v485_v26 = vrot.slane %v479_v20, 1  ;;  %v400_v27 = vmul.f32 %v1555_v22, %v386_v21  ;;  %v906_v9 = vld [vmem:[#allocation2 + $0x30] sm:$0x7]  ;;  %v864_v21 = vld [vmem:[#allocation2 + $0x68] sm:$0xf8] }
  0x92   : > { %v1504_v46 = vunpack.i.l.bf16 %v1382_v43  ;;  %487 = vrot.lane.b32.xlu1 %v484_v40, %s1406_s11  ;;  %v518_v47 = vrot.slane %v512_v41, 6  ;;  %v1508_v48 = vunpack.i.h.bf16 %v1387_v44  ;;  %v405_v49 = vrot.slane %v399_v42, 2  ;;  %v458_v40 = vld [vmem:[#allocation2 + $0x50] sm:$0x7]  ;;  %v766_v41 = vld [vmem:[#allocation2] sm:$0xf8] }
  0x93   : > { %v1513_v55 = vunpack.i.l.bf16 %v1387_v44  ;;  %v1525_v63 = vunpack.i.h.bf16 %v1382_v43  ;;  %v407_v12 = vrot.slane %v401_v2, 2  ;;  %v520_v25 = vrot.slane %v514_v19, 6  ;;  %v769_v44 = vld [vmem:[#allocation2 + $0x70] sm:$0x7] }
  0x94   : > { %521 = vrot.lane.b32.xlu0 %v518_v47, %s1405_s10  ;;  %v435_v50 = vmul.f32 %v1504_v46, %v423_v45  ;;  %v346_v59 = vmul.f32 %v1508_v48, %v332_v51  ;;  %v513_v31 = vmul.f32 %v1560_v24, %v502_v23  ;;  %v406_v35 = vrot.slane %v400_v27, 2  ;;  %v457_v45 = vld [vmem:[#allocation2 + $0x40] sm:$0x7]  ;;  %v363_v47 = vld [vmem:[#allocation2 + $0x8] sm:$0x7] }
  0x95   : > { %v543_v52 = vpop.permute.xlu1 %542  ;;  %v547_v61 = vpop.permute.xlu0 %546  ;;  %v1532_v5 = vsel %vm339_vm5, %v1513_v55, %v1508_v48  ;;  %v437_v13 = vmul.f32 %v1525_v63, %v425_v6  ;;  %v1569_v33 = vsel %vm430_vm10, %v1504_v46, %v1525_v63  ;;  %v462_v42 = vrot.slane %v458_v40, 4  ;;  %v330_v51 = vld [vmem:[#allocation2 + $0x8] sm:$0x7]  ;;  %v867_v23 = vld [vmem:[#allocation2 + $0x30] sm:$0x7] }
  0x96   : > { %v441_v54 = vrot.slane %v435_v50, 7  ;;  %v345_v11 = vmul.f32 %v1532_v5, %v331_v4  ;;  %v519_v36 = vrot.slane %v513_v31, 6  ;;  %v436_v37 = vmul.f32 %v1569_v33, %v424_v32 }
  0x97   : > { %v443_v18 = vrot.slane %v437_v13, 7  ;;  %v371_v43 = vrot.slane %v365_v34, 5  ;;  %466 = vst [vmem:[#allocation3 + $0x10] sm:$0x70] %v462_v42  ;;  %v981_v2 = vmul.f32 %v1487_v28, %v975_v56  ;;  %v984_v3 = vmul.f32 %v1487_v28, %v978_v58 }
  0x98   : > { %408 = vrot.lane.b32.xlu0 %v405_v49, %s1404_s9  ;;  %444 = vrot.lane.b32.xlu1 %v441_v54, %s1403_s8  ;;  %v461_v49 = vrot.slane %v457_v45, 4  ;;  %v442_v50 = vrot.slane %v436_v37, 7  ;;  %v775_v54 = vmul.f32 %v1500_v39, %v769_v44  ;;  %v912_v20 = vmul.f32 %v1539_v10, %v906_v9 }
  0x99   : > { %v545_v62 = vpop.permute.xlu1 %544  ;;  %v997_v14 = vrot.slane %v981_v2, 3  ;;  %v998_v15 = vrot.slane %v984_v3, 3  ;;  %v375_v42 = vpop.permute.xlu0 %374 }
  0x9a   : > { %v549_v7 = vsel %vm548_vm6, %v543_v52, %v545_v62  ;;  %v550_v8 = vsel %vm548_vm6, %v545_v62, %v547_v61  ;;  %v772_v52 = vmul.f32 %v1500_v39, %v766_v41  ;;  %465 = vst [vmem:[#allocation3 + $0x38] sm:$0x70] %v461_v49  ;;  %v344_v61 = vmul.f32 %v1513_v55, %v330_v51  ;;  %v942_v62 = vld [vmem:[#allocation2 + $0x68] sm:$0xf8]  ;;  %v808_v39 = vld [vmem:[#allocation2 + $0x70] sm:$0x7] }
  0x9b   : > { %553 = vst [vmem:[#allocation3 + $0x8] sm:$0xe0] %v549_v7  ;;  %554 = vst [vmem:[#allocation3 + $0x30] sm:$0xe0] %v550_v8  ;;  %v785_v6 = vrot.slane %v775_v54, 3  ;;  %v926_v34 = vrot.slane %v912_v20, 3 }
  0x9c   : > { %574 = vrot.lane.b32.xlu0 %v567_v0, %s1407_s12  ;;  %354 = vrot.lane.b32.xlu1 %v346_v59, %s1402_s30  ;;  %v369_v59 = vrot.slane %v363_v47, 5  ;;  %v945_v0 = vld [vmem:[#allocation2 + $0x30] sm:$0x7]  ;;  %v784_v4 = vrot.slane %v772_v52, 3  ;;  %v805_v7 = vld [vmem:[#allocation2] sm:$0xf8] }
  0x9d   : > { %v903_v8 = vld [vmem:[#allocation2 + $0x68] sm:$0xf8]  ;;  %v959_v13 = vrot.slane %v945_v0, 3  ;;  %v811_v28 = vmul.f32 %v1504_v46, %v805_v7 }
  0x9e   : > { %v909_v19 = vmul.f32 %v1539_v10, %v903_v8 }
  0x9f   : > { %v823_v27 = vrot.slane %v811_v28, 3 }
  0xa0   : > { %352 = vrot.lane.b32.xlu0 %v345_v11, %s1402_s30  ;;  %412 = vrot.lane.b32.xlu1 %v407_v12, %s1404_s9  ;;  %v593_v11 = vld [vmem:[%s1740_s2] sm:$0xff]  ;;  %v958_v12 = vrot.slane %v942_v62, 3  ;;  %v925_v32 = vrot.slane %v909_v19, 3 }
  0xa4   : > { %491 = vrot.lane.b32.xlu0 %v486_v17, %s1406_s11  ;;  %448 = vrot.lane.b32.xlu1 %v443_v18, %s1403_s8  ;;  %v814_v17 = vmul.f32 %v1504_v46, %v808_v39  ;;  %v786_v18 = vsel %vm711_vm11, %v784_v4, %v785_v6  ;;  %v870_v46 = vmul.f32 %v1523_v60, %v864_v21 }
  0xa6   : > { %v824_v31 = vrot.slane %v814_v17, 3  ;;  %v886_v37 = vrot.slane %v870_v46, 3 }
  0xa8   : > { %525 = vrot.lane.b32.xlu0 %v520_v25, %s1405_s10  ;;  %489 = vrot.lane.b32.xlu1 %v485_v26, %s1406_s11  ;;  %v960_v25 = vsel %vm711_vm11, %v958_v12, %v959_v13  ;;  %v999_v26 = vsel %vm711_vm11, %v997_v14, %v998_v15  ;;  %v825_v10 = vsel %vm711_vm11, %v823_v27, %v824_v31 }
  0xac   : > { %410 = vrot.lane.b32.xlu0 %v406_v35, %s1404_s9  ;;  %523 = vrot.lane.b32.xlu1 %v519_v36, %s1405_s10  ;;  %v873_v35 = vmul.f32 %v1523_v60, %v867_v23  ;;  %v927_v36 = vsel %vm711_vm11, %v925_v32, %v926_v34  ;;  %v584_v34 = vld [vmem:[%s1739_s1] sm:$0xff] }
  0xae   : > { %v887_v40 = vrot.slane %v873_v35, 3 }
  0xb0   : > { %446 = vrot.lane.b32.xlu0 %v442_v50, %s1403_s8  ;;  %376 = vrot.lane.b32.xlu1 %v371_v43, %s1409_s14  ;;  %v888_v41 = vsel %vm711_vm11, %v886_v37, %v887_v40 }
  0xb4   : > { %350 = vrot.lane.b32.xlu0 %v344_v61, %s1402_s30  ;;  %372 = vrot.lane.b32.xlu1 %v369_v59, %s1409_s14 }
  0xb8   : > { %596 = vperm.xlu0 %1390, %v593_v11   ;;  %793 = vrot.lane.b32.xlu1 %v786_v18, %s1404_s9 }
  0xbc   : > { %965 = vrot.lane.b32.xlu0 %v960_v25, %s1408_s13  ;;  %1004 = vrot.lane.b32.xlu1 %v999_v26, %s1407_s12 }
  0xc0   : > { %832 = vrot.lane.b32.xlu0 %v825_v10, %s1403_s8  ;;  %932 = vrot.lane.b32.xlu1 %v927_v36, %s1405_s10 }
  0xc4   : > { %893 = vrot.lane.b32.xlu0 %v888_v41, %s1406_s11 }
 0x100   : > { %v577_v60 = vpop.permute.xlu1 %576  ;;  %v573_v43 = vpop.permute.xlu0 %572 }
 0x104   : > { %v488_v44 = vpop.permute.xlu1 %487 }
 0x106   : > { %v522_v45 = vpop.permute.xlu0 %521 }
 0x10a   : > { %v409_v47 = vpop.permute.xlu0 %408  ;;  %v445_v49 = vpop.permute.xlu1 %444 }
 0x10e   : > { %v575_v50 = vpop.permute.xlu0 %574  ;;  %v355_v51 = vpop.permute.xlu1 %354 }
 0x10f   : > { %v578_v52 = vsel %vm339_vm5, %v573_v43, %v575_v50  ;;  %v579_v54 = vsel %vm339_vm5, %v575_v50, %v577_v60 }
 0x110   : > { %582 = vst [vmem:[#allocation3 + $0x18] sm:$0x7] %v578_v52  ;;  %583 = vst [vmem:[#allocation3] sm:$0x7] %v579_v54 }
 0x112   : > { %v353_v56 = vpop.permute.xlu0 %352  ;;  %v413_v58 = vpop.permute.xlu1 %412 }
 0x113   : > { %v358_v59 = vsel %vm356_vm4, %v353_v56, %v355_v51 }
 0x114   : > { %362 = vst [vmem:[#allocation3 + $0x20] sm:$0x7] %v358_v59 }
 0x116   : > { %v492_v61 = vpop.permute.xlu0 %491  ;;  %v449_v62 = vpop.permute.xlu1 %448 }
 0x117   : > { %v592_v0 = vld [vmem:[#allocation3] sm:$0x7]  ;;  %v591_v2 = vld [vmem:[#allocation3 + $0x18] sm:$0x7] }
 0x118   : > { %1329 = vmatprep.subr.msk.mxu0 %vm603_vm12, %v592_v0 }
 0x119   : > { %1330 = vmatpush1.msk.msra.mxu0 %vm603_vm12, %v591_v2 }
 0x11a   : > { %v526_v3 = vpop.permute.xlu0 %525  ;;  %v490_v4 = vpop.permute.xlu1 %489 }
 0x11b   : > { %v493_v6 = vsel %vm430_vm10, %v488_v44, %v490_v4  ;;  %v494_v7 = vsel %vm430_vm10, %v490_v4, %v492_v61 }
 0x11c   : > { %497 = vst [vmem:[#allocation3 + $0x8] ss:$52 sps:$4 sm:$0x83] %v493_v6   ;;  %498 = vst [vmem:[#allocation3 + $0x30] ss:$-28 sps:$4 sm:$0x83] %v494_v7  }
 0x11e   : > { %v411_v39 = vpop.permute.xlu0 %410  ;;  %v524_v8 = vpop.permute.xlu1 %523 }
 0x11f   : > { %v415_v9 = vsel %vm414_vm9, %v409_v47, %v411_v39  ;;  %v416_v11 = vsel %vm414_vm9, %v411_v39, %v413_v58  ;;  %v527_v12 = vsel %vm394_vm8, %v522_v45, %v524_v8  ;;  %v528_v13 = vsel %vm394_vm8, %v524_v8, %v526_v3 }
 0x120   : > { %419 = vst [vmem:[#allocation3 + $0x38] ss:$-12 sps:$4 sm:$0xc1] %v415_v9   ;;  %420 = vst [vmem:[#allocation3 + $0x10] ss:$20 sps:$4 sm:$0xc1] %v416_v11  }
 0x121   : > { %531 = vst [vmem:[#allocation3 + $0x8] sm:$0x1c] %v527_v12  ;;  %532 = vst [vmem:[#allocation3 + $0x30] sm:$0x1c] %v528_v13 }
 0x122   : > { %v447_v14 = vpop.permute.xlu0 %446  ;;  %v377_v15 = vpop.permute.xlu1 %376 }
 0x123   : > { %v451_v28 = vsel %vm450_vm7, %v445_v49, %v447_v14  ;;  %v452_v17 = vsel %vm450_vm7, %v447_v14, %v449_v62  ;;  %v380_v18 = vsel %vm378_vm13, %v375_v42, %v377_v15 }
 0x124   : > { %455 = vst [vmem:[#allocation3 + $0x38] sm:$0xe] %v451_v28  ;;  %456 = vst [vmem:[#allocation3 + $0x10] sm:$0xe] %v452_v17 }
 0x125   : > { %384 = vst [vmem:[#allocation3 + $0x20] sm:$0x38] %v380_v18 }
 0x126   : > { %v351_v19 = vpop.permute.xlu0 %350  ;;  %v373_v20 = vpop.permute.xlu1 %372 }
 0x127   : > { %v357_v21 = vsel %vm356_vm4, %v351_v19, %v353_v56  ;;  %v379_v23 = vsel %vm378_vm13, %v373_v20, %v375_v42 }
 0x128   : > { %v590_v25 = vld [vmem:[#allocation3 + $0x30] sm:$0xff]  ;;  %v589_v26 = vld [vmem:[#allocation3 + $0x8] sm:$0xff]  ;;  %361 = vst [vmem:[#allocation3 + $0x28] sm:$0x7] %v357_v21  ;;  %383 = vst [vmem:[#allocation3 + $0x28] sm:$0x38] %v379_v23 }
 0x129   : > { %636 = vmatprep.subr.mxu0 %v590_v25 }
 0x12a   : > { %637 = vmatpush1.msra.mxu0 %v589_v26 }
 0x12b   : > { %v588_v27 = vld [vmem:[#allocation3 + $0x10] sm:$0xff]  ;;  %v587_v31 = vld [vmem:[#allocation3 + $0x38] sm:$0xff] }
 0x12c   : > { %638 = vmatprep.subr.mxu0 %v588_v27  ;;  %v586_v32 = vld [vmem:[#allocation3 + $0x20] sm:$0xff] }
 0x12d   : > { %639 = vmatpush1.msra.mxu0 %v587_v31 }
 0x12e   : > { %640 = vmatprep.subr.mxu0 %v586_v32 }
 0x12f   : > { %v585_v46 = vld [vmem:[#allocation3 + $0x28] sm:$0xff] }
 0x130   : > { %641 = vmatpush1.msra.mxu0 %v585_v46 }
 0x131   : > { %1331 = vmatmul.mubr.msk.f32.vlgmr.msra.gmra.mxu0 %vm599_vm14, %v584_v34 }
 0x132   : > { %1242 = vmatprep.mubr.f32.mxu0 %v1401_v1 }
 0x133   : > { %v597_v35 = vpop.permute.xlu0 %596 }
 0x1f1   : > { %v676_v10 = vpop.f32.mrf.mxu0 }
 0x1f2   : > { %v677_v36 = vadd.f32 %v676_v10, %v597_v35 }
 0x1f3   : > { %v678_v37 = vpop.f32.mrf.mxu0 }
 0x1f4   : > { %v681_v40 = vmax.f32 %v677_v36, 0.0  ;;  %v679_v41 = vadd.f32 %v678_v37, %v597_v35 }
 0x1f6   : > { %v685_v42 = vrot.slane %v681_v40, 5  ;;  %v682_v60 = vmax.f32 %v679_v41, 0.0 }
 0x1f8   : > { %689 = vst [vmem:[#allocation2 + $0x48] sm:$0xf8] %v685_v42  ;;  %691 = vst [vmem:[#allocation2 + $0x60] sm:$0x7] %v685_v42  ;;  %v686_v43 = vrot.slane %v682_v60, 5 }
 0x1fa   : > { %690 = vst [vmem:[#allocation2 + $0x58] sm:$0xf8] %v686_v43  ;;  %692 = vst [vmem:[#allocation2 + $0x10] sm:$0x7] %v686_v43 }
 0x1ff   : > { %v940_v44 = vld [vmem:[#allocation2 + $0x48] sm:$0xf8]  ;;  %v943_v45 = vld [vmem:[#allocation2 + $0x60] sm:$0x7] }
 0x200   : > { %v1161_v47 = vld [vmem:[#allocation2 + $0x60] sm:$0x7]  ;;  %v952_v49 = vrot.slane %v940_v44, 3  ;;  %v953_v50 = vrot.slane %v943_v45, 3  ;;  %v734_v51 = vld [vmem:[#allocation2 + $0x48] sm:$0xf8] }
 0x201   : > { %v737_v52 = vld [vmem:[#allocation2 + $0x60] sm:$0x7]  ;;  %v1162_v54 = vld [vmem:[#allocation2 + $0x10] sm:$0x7]  ;;  %v748_v56 = vrot.slane %v734_v51, 3 }
 0x202   : > { %v749_v58 = vrot.slane %v737_v52, 3  ;;  %v941_v59 = vld [vmem:[#allocation2 + $0x58] sm:$0xf8]  ;;  %1334 = vmatprep.subr.msk.mxu0 %vm603_vm12, %v1162_v54  ;;  %v954_v61 = vsel %vm711_vm11, %v952_v49, %v953_v50  ;;  %v944_v62 = vld [vmem:[#allocation2 + $0x10] sm:$0x7] }
 0x203   : > { %v955_v0 = vrot.slane %v941_v59, 3  ;;  %v973_v2 = vld [vmem:[#allocation2 + $0x48] sm:$0xf8]  ;;  %1335 = vmatpush1.msk.msra.mxu0 %vm603_vm12, %v1161_v47  ;;  %961 = vrot.lane.b32.xlu1 %v954_v61, %s1408_s13  ;;  %v956_v4 = vrot.slane %v944_v62, 3  ;;  %v976_v6 = vld [vmem:[#allocation2 + $0x60] sm:$0x7] }
 0x204   : > { %v750_v3 = vsel %vm711_vm11, %v748_v56, %v749_v58  ;;  %v979_v7 = vmul.f32 %v1489_v29, %v973_v2  ;;  %v862_v39 = vld [vmem:[#allocation2 + $0x48] sm:$0xf8]  ;;  %v982_v8 = vmul.f32 %v1489_v29, %v976_v6  ;;  %v865_v9 = vld [vmem:[#allocation2 + $0x60] sm:$0x7]  ;;  %v977_v34 = vld [vmem:[#allocation2 + $0x10] sm:$0x7] }
 0x205   : > { %756 = vrot.lane.b32.xlu0 %v750_v3, %s1409_s14  ;;  %v868_v11 = vmul.f32 %v1491_v30, %v862_v39  ;;  %v901_v12 = vld [vmem:[#allocation2 + $0x48] sm:$0xf8]  ;;  %v904_v13 = vld [vmem:[#allocation2 + $0x60] sm:$0x7]  ;;  %v957_v14 = vsel %vm711_vm11, %v955_v0, %v956_v4  ;;  %v871_v28 = vmul.f32 %v1491_v30, %v865_v9  ;;  %v974_v30 = vld [vmem:[#allocation2 + $0x58] sm:$0xf8]  ;;  %v983_v60 = vmul.f32 %v977_v34, %v1518_v57 }
 0x206   : > { %v991_v15 = vrot.slane %v979_v7, 3  ;;  %v907_v17 = vmul.f32 %v1496_v38, %v901_v12  ;;  %v767_v18 = vld [vmem:[#allocation2 + $0x48] sm:$0xf8]  ;;  %v770_v19 = vld [vmem:[#allocation2 + $0x60] sm:$0x7]  ;;  %v992_v20 = vrot.slane %v982_v8, 3  ;;  %v910_v23 = vmul.f32 %v1496_v38, %v904_v13 }
 0x207   : > { %v880_v21 = vrot.slane %v868_v11, 3  ;;  %v773_v29 = vmul.f32 %v767_v18, %v1555_v22  ;;  %v806_v25 = vld [vmem:[#allocation2 + $0x48] sm:$0xf8]  ;;  %v809_v26 = vld [vmem:[#allocation2 + $0x60] sm:$0x7]  ;;  %963 = vrot.lane.b32.xlu1 %v957_v14, %s1408_s13  ;;  %v881_v27 = vrot.slane %v871_v28, 3  ;;  %v776_v31 = vmul.f32 %v770_v19, %v1555_v22 }
 0x208   : > { %v812_v32 = vmul.f32 %v806_v25, %v1569_v33  ;;  %v993_v46 = vsel %vm711_vm11, %v991_v15, %v992_v20  ;;  %v919_v35 = vrot.slane %v907_v17, 3  ;;  %v920_v10 = vrot.slane %v910_v23, 3  ;;  %v902_v37 = vld [vmem:[#allocation2 + $0x58] sm:$0xf8]  ;;  %v905_v40 = vld [vmem:[#allocation2 + $0x10] sm:$0x7] }
 0x209   : > { %v815_v36 = vmul.f32 %v809_v26, %v1569_v33  ;;  %1000 = vrot.lane.b32.xlu0 %v993_v46, %s1407_s12  ;;  %v787_v38 = vrot.slane %v773_v29, 3  ;;  %v882_v41 = vsel %vm711_vm11, %v880_v21, %v881_v27  ;;  %v788_v42 = vrot.slane %v776_v31, 3  ;;  %v733_v49 = vld [vmem:[#allocation2] sm:$0xf8]  ;;  %v735_v54 = vld [vmem:[#allocation2 + $0x58] sm:$0xf8] }
 0x20a   : > { %v980_v22 = vmul.f32 %v974_v30, %v1518_v57  ;;  %v826_v43 = vrot.slane %v812_v32, 3  ;;  %v921_v44 = vsel %vm711_vm11, %v919_v35, %v920_v10  ;;  %v908_v33 = vmul.f32 %v902_v37, %v1560_v24  ;;  %v736_v56 = vld [vmem:[#allocation2 + $0x70] sm:$0x7]  ;;  %v863_v58 = vld [vmem:[#allocation2 + $0x58] sm:$0xf8] }
 0x20b   : > { %889 = vrot.lane.b32.xlu1 %v882_v41, %s1406_s11  ;;  %v827_v45 = vrot.slane %v815_v36, 3  ;;  %v911_v47 = vmul.f32 %v905_v40, %v1560_v24  ;;  %v789_v50 = vsel %vm711_vm11, %v787_v38, %v788_v42  ;;  %v995_v52 = vrot.slane %v983_v60, 3  ;;  %v738_v57 = vld [vmem:[#allocation2 + $0x10] sm:$0x7]  ;;  %v768_v4 = vld [vmem:[#allocation2 + $0x58] sm:$0xf8] }
 0x20c   : > { %v994_v51 = vrot.slane %v980_v22, 3  ;;  %v866_v59 = vld [vmem:[#allocation2 + $0x10] sm:$0x7]  ;;  %v922_v62 = vrot.slane %v908_v33, 3  ;;  %v745_v2 = vrot.slane %v733_v49, 3  ;;  %v751_v24 = vrot.slane %v735_v54, 3  ;;  %v794_v49 = vpop.permute.xlu1 %793 }
 0x20d   : > { %928 = vrot.lane.b32.xlu0 %v921_v44, %s1405_s10  ;;  %v828_v61 = vsel %vm711_vm11, %v826_v43, %v827_v45  ;;  %v923_v0 = vrot.slane %v911_v47, 3  ;;  %v746_v3 = vrot.slane %v736_v56, 3  ;;  %v771_v6 = vld [vmem:[#allocation2 + $0x10] sm:$0x7]  ;;  %v752_v39 = vrot.slane %v738_v57, 3  ;;  %v1033_v60 = vld [vmem:[%s1742_s4 + $0x8] sm:$0xff] }
 0x20e   : > { %v996_v7 = vsel %vm711_vm11, %v994_v51, %v995_v52  ;;  %v869_v8 = vmul.f32 %v863_v58, %v1546_v16  ;;  %v872_v9 = vmul.f32 %v866_v59, %v1546_v16  ;;  %v807_v11 = vld [vmem:[#allocation2 + $0x58] sm:$0xf8]  ;;  %v810_v12 = vld [vmem:[#allocation2 + $0x10] sm:$0x7]  ;;  %v774_v14 = vmul.f32 %v1511_v53, %v768_v4  ;;  %v694_v29 = vld [vmem:[#allocation2 + $0x48] sm:$0xf8] }
 0x20f   : > { %795 = vrot.lane.b32.xlu1 %v789_v50, %s1404_s9  ;;  %v924_v13 = vsel %vm711_vm11, %v922_v62, %v923_v0  ;;  %v777_v15 = vmul.f32 %v1511_v53, %v771_v6  ;;  %v747_v28 = vsel %vm711_vm11, %v745_v2, %v746_v3  ;;  %v813_v17 = vmul.f32 %v1525_v63, %v807_v11  ;;  %v695_v18 = vld [vmem:[#allocation2 + $0x58] sm:$0xf8]  ;;  %v698_v19 = vld [vmem:[#allocation2 + $0x10] sm:$0x7]  ;;  %v697_v25 = vld [vmem:[#allocation2 + $0x60] sm:$0x7]  ;;  %v966_v50 = vpop.permute.xlu0 %965 }
 0x210   : > { %v753_v16 = vsel %vm711_vm11, %v751_v24, %v752_v39  ;;  %v883_v20 = vrot.slane %v869_v8, 3  ;;  %v884_v21 = vrot.slane %v872_v9, 3  ;;  %v816_v23 = vmul.f32 %v1525_v63, %v810_v12  ;;  %v693_v35 = vld [vmem:[#allocation2] sm:$0xf8]  ;;  %v696_v10 = vld [vmem:[#allocation2 + $0x70] sm:$0x7]  ;;  %v1005_v51 = vpop.permute.xlu1 %1004 }
 0x211   : > { %834 = vrot.lane.b32.xlu0 %v828_v61, %s1403_s8  ;;  %v790_v26 = vrot.slane %v774_v14, 3  ;;  %v791_v53 = vrot.slane %v777_v15, 3  ;;  %v701_v27 = vmul.f32 %v1508_v48, %v695_v18  ;;  %v704_v31 = vmul.f32 %v1508_v48, %v698_v19  ;;  %v1032_v47 = vld [vmem:[%s1742_s4] sm:$0xff]  ;;  %v845_v11 = vld [vmem:[#allocation2 + $0x58] sm:$0xf8] }
 0x212   : > { %v829_v32 = vrot.slane %v813_v17, 3  ;;  %v885_v30 = vsel %vm711_vm11, %v883_v20, %v884_v21  ;;  %v830_v34 = vrot.slane %v816_v23, 3  ;;  %v700_v46 = vmul.f32 %v694_v29, %v1532_v5  ;;  %v847_v12 = vld [vmem:[#allocation2 + $0x10] sm:$0x7]  ;;  %v844_v14 = vld [vmem:[#allocation2 + $0x48] sm:$0xf8] }
 0x213   : > { %1002 = vrot.lane.b32.xlu1 %v996_v7, %s1407_s12  ;;  %v703_v63 = vmul.f32 %v697_v25, %v1532_v5  ;;  %v792_v36 = vsel %vm711_vm11, %v790_v26, %v791_v53  ;;  %v718_v38 = vrot.slane %v701_v27, 3  ;;  %v719_v37 = vrot.slane %v704_v31, 3  ;;  %v833_v52 = vpop.permute.xlu0 %832  ;;  %v846_v15 = vld [vmem:[#allocation2 + $0x60] sm:$0x7] }
 0x214   : > { %v699_v48 = vmul.f32 %v1513_v55, %v693_v35  ;;  %v831_v40 = vsel %vm711_vm11, %v829_v32, %v830_v34  ;;  %v715_v41 = vrot.slane %v700_v46, 3  ;;  %v702_v22 = vmul.f32 %v1513_v55, %v696_v10  ;;  %v1163_v55 = vld [vmem:[%s1744_s6] sm:$0x3]  ;;  %v933_v54 = vpop.permute.xlu1 %932 }
 0x215   : > { %930 = vrot.lane.b32.xlu0 %v924_v13, %s1405_s10  ;;  %v716_v42 = vrot.slane %v703_v63, 3  ;;  %v720_v5 = vsel %vm711_vm11, %v718_v38, %v719_v37  ;;  %v855_v18 = vrot.slane %v845_v11, 3  ;;  %v856_v19 = vrot.slane %v847_v12, 3  ;;  %v1012_v37 = vld [vmem:[%s1741_s3] sm:$0xff]  ;;  %s1341_s10 = sshll.u32 %s1747_s25, 2 }
 0x216   : > { %v712_v44 = vrot.slane %v699_v48, 3  ;;  %v713_v45 = vrot.slane %v702_v22, 3  ;;  %v852_v20 = vrot.slane %v844_v14, 3  ;;  %v853_v21 = vrot.slane %v846_v15, 3  ;;  %s278_s13 = scalar_lea.vmem %s1745_s7, %s1341_s10 }
 0x217   : > { %758 = vrot.lane.b32.xlu1 %v753_v16, %s1409_s14  ;;  %v717_v43 = vsel %vm711_vm11, %v715_v41, %v716_v42  ;;  %v894_v56 = vpop.permute.xlu0 %893  ;;  %v857_v25 = vsel %vm711_vm11, %v855_v18, %v856_v19 }
 0x218   : > { %v714_v33 = vsel %vm711_vm11, %v712_v44, %v713_v45  ;;  %v854_v27 = vsel %vm711_vm11, %v852_v20, %v853_v21 }
 0x219   : > { %754 = vrot.lane.b32.xlu0 %v747_v28, %s1409_s14 }
 0x21b   : > { %891 = vrot.lane.b32.xlu1 %v885_v30, %s1406_s11 }
 0x21d   : > { %797 = vrot.lane.b32.xlu0 %v792_v36, %s1404_s9 }
 0x21f   : > { %836 = vrot.lane.b32.xlu1 %v831_v40, %s1403_s8  ;;  %v1013_v40 = vld [vmem:[%s1741_s3 + $0x8] sm:$0xff] }
 0x221   : > { %725 = vrot.lane.b32.xlu0 %v720_v5, %s1402_s30 }
 0x223   : > { %723 = vrot.lane.b32.xlu1 %v717_v43, %s1402_s30 }
 0x225   : > { %1041 = vperm.xlu0 %1390, %v1033_v60  }
 0x227   : > { %721 = vrot.lane.b32.xlu1 %v714_v33, %s1402_s30 }
 0x229   : > { %1166 = vperm.xlu0 %1390, %v1163_v55  }
 0x22b   : > { %1036 = vperm.xlu1 %1391, %v1032_v47  }
 0x275   : > { %v962_v57 = vpop.permute.xlu1 %961 }
 0x277   : > { %v757_v58 = vpop.permute.xlu0 %756 }
 0x279   : > { %v964_v59 = vpop.permute.xlu1 %963 }
 0x27a   : > { %v968_v39 = vsel %vm548_vm6, %v964_v59, %v966_v50  ;;  %v967_v9 = vsel %vm548_vm6, %v962_v57, %v964_v59 }
 0x27b   : > { %v1001_v61 = vpop.permute.xlu0 %1000 }
 0x27d   : > { %v890_v62 = vpop.permute.xlu1 %889 }
 0x27f   : > { %v929_v0 = vpop.permute.xlu0 %928 }
 0x281   : > { %v796_v2 = vpop.permute.xlu1 %795 }
 0x282   : > { %v799_v46 = vsel %vm414_vm9, %v794_v49, %v796_v2 }
 0x283   : > { %v835_v24 = vpop.permute.xlu0 %834 }
 0x284   : > { %v838_v32 = vsel %vm450_vm7, %v833_v52, %v835_v24 }
 0x285   : > { %v1003_v3 = vpop.permute.xlu1 %1002 }
 0x286   : > { %v1007_v4 = vsel %vm339_vm5, %v1003_v3, %v1005_v51  ;;  %v1006_v6 = vsel %vm339_vm5, %v1001_v61, %v1003_v3 }
 0x287   : > { %v931_v7 = vpop.permute.xlu0 %930  ;;  %1065 = vmatprep.subr.mxu1 %v1007_v4 }
 0x288   : > { %1066 = vmatpush1.msra.mxu1 %v1006_v6  ;;  %v935_v13 = vsel %vm394_vm8, %v931_v7, %v933_v54  ;;  %v934_v17 = vsel %vm394_vm8, %v929_v0, %v931_v7  ;;  %v1154_v0 = vld [vmem:[%s1743_s5] sm:$0x3] }
 0x289   : > { %1067 = vmatprep.subr.mxu1 %v968_v39  ;;  %v759_v8 = vpop.permute.xlu1 %758 }
 0x28a   : > { %1068 = vmatpush1.msra.mxu1 %v967_v9  ;;  %v761_v63 = vsel %vm378_vm13, %v757_v58, %v759_v8 }
 0x28b   : > { %v755_v28 = vpop.permute.xlu0 %754  ;;  %1069 = vmatprep.subr.mxu1 %v935_v13 }
 0x28c   : > { %1070 = vmatpush1.msra.mxu1 %v934_v17  ;;  %v760_v10 = vsel %vm378_vm13, %v755_v28, %v757_v58 }
 0x28d   : > { %v892_v16 = vpop.permute.xlu1 %891 }
 0x28e   : > { %v896_v23 = vsel %vm430_vm10, %v892_v16, %v894_v56  ;;  %v895_v29 = vsel %vm430_vm10, %v890_v62, %v892_v16 }
 0x28f   : > { %1071 = vmatprep.subr.mxu1 %v896_v23  ;;  %v798_v26 = vpop.permute.xlu0 %797 }
 0x290   : > { %1072 = vmatpush1.msra.mxu1 %v895_v29  ;;  %v800_v30 = vsel %vm414_vm9, %v796_v2, %v798_v26 }
 0x291   : > { %1073 = vmatprep.subr.mxu1 %v857_v25  ;;  %v837_v53 = vpop.permute.xlu1 %836 }
 0x292   : > { %1074 = vmatpush1.msra.mxu1 %v854_v27  ;;  %v839_v31 = vsel %vm450_vm7, %v835_v24, %v837_v53 }
 0x293   : > { %1075 = vmatprep.subr.mxu1 %v839_v31  ;;  %v726_v35 = vpop.permute.xlu0 %725 }
 0x294   : > { %1076 = vmatpush1.msra.mxu1 %v838_v32 }
 0x295   : > { %1077 = vmatprep.subr.mxu1 %v800_v30  ;;  %v724_v34 = vpop.permute.xlu1 %723 }
 0x296   : > { %1078 = vmatpush1.msra.mxu1 %v799_v46  ;;  %v728_v36 = vsel %vm356_vm4, %v724_v34, %v726_v35 }
 0x297   : > { %1079 = vmatprep.subr.mxu1 %v761_v63 }
 0x298   : > { %1080 = vmatpush1.msra.mxu1 %v760_v10 }
 0x299   : > { %1081 = vmatprep.subr.mxu1 %v728_v36  ;;  %v722_v38 = vpop.permute.xlu1 %721 }
 0x29a   : > { %v727_v48 = vsel %vm356_vm4, %v722_v38, %v724_v34 }
 0x29b   : > { %1082 = vmatpush1.msra.mxu1 %v727_v48 }
 0x29c   : > { %1332 = vmatmul.mubr.msk.f32.vlgmr.msra.gmra.mxu1 %vm1044_vm15, %v1012_v37 }
 0x29d   : > { %1121 = vmatprep.mubr.f32.mxu1 %v1401_v1 }
 0x2a0   : > { %1333 = vmatmul.mubr.msk.f32.gmra.mxu1 %vm1044_vm15, %v1013_v40  ;;  %v1042_v44 = vpop.permute.xlu0 %1041 }
 0x2a4   : > { %v1167_v3 = vpop.permute.xlu0 %1166 }
 0x2a6   : > { %v1037_v41 = vpop.permute.xlu1 %1036 }
 0x35c   : > { %v1117_v42 = vpop.f32.mrf.mxu1 }
 0x35d   : > { %v1118_v22 = vadd.f32 %v1117_v42, %v1037_v41 }
 0x35e   : > { %v1119_v5 = vpop.f32.mrf.mxu1 }
 0x35f   : > { %v1128_v60 = vmax.f32 %v1118_v22, 0.0  ;;  %v1120_v43 = vadd.f32 %v1119_v5, %v1037_v41 }
 0x360   : > { %v1123_v45 = vpop.f32.mrf.mxu1 }
 0x361   : > { %v1136_v55 = vrot.slane %v1128_v60, 5  ;;  %v1129_v33 = vmax.f32 %v1120_v43, 0.0  ;;  %v1124_v47 = vadd.f32 %v1123_v45, %v1042_v44 }
 0x362   : > { %v1125_v49 = vpop.f32.mrf.mxu1 }
 0x363   : > { %1148 = vst [vmem:[#allocation2 + $0x40] sm:$0xf8] %v1136_v55  ;;  %v1137_v50 = vrot.slane %v1129_v33, 5  ;;  %v1130_v1 = vmax.f32 %v1124_v47, 0.0  ;;  %v1126_v51 = vadd.f32 %v1125_v49, %v1042_v44 }
 0x365   : > { %1149 = vst [vmem:[#allocation2 + $0x50] sm:$0xf8] %v1137_v50  ;;  %v1138_v52 = vrot.slane %v1130_v1, 5  ;;  %v1131_v54 = vmax.f32 %v1126_v51, 0.0 }
 0x367   : > { %v1139_v56 = vsel %vm603_vm12, %v1136_v55, %v1138_v52  ;;  %1152 = vst [vmem:[#allocation2 + $0x48] sm:$0x7] %v1138_v52  ;;  %v1140_v57 = vrot.slane %v1131_v54, 5 }
 0x369   : > { %v1141_v58 = vsel %vm603_vm12, %v1137_v50, %v1140_v57  ;;  %1153 = vst [vmem:[#allocation2 + $0x58] sm:$0x7] %v1140_v57 }
 0x36a   : > { %v1155_v2 = vld [vmem:[#allocation2 + $0x40] sm:$0xff] }
 0x36c   : > { %v1156_v62 = vld [vmem:[#allocation2 + $0x50] sm:$0xff] }
 0x36e   : > { %v1159_v61 = vld [vmem:[#allocation2 + $0x48] sm:$0xff] }
 0x370   : > { %v1160_v59 = vld [vmem:[#allocation2 + $0x58] sm:$0xff] }
 0x371   : > { %1204 = vmatprep.subr.mxu0 %v1160_v59 }
 0x372   : > { %1205 = vmatpush1.msra.mxu0 %v1159_v61 }
 0x373   : > { %1206 = vmatprep.subr.mxu0 %v1141_v58 }
 0x374   : > { %1207 = vmatpush1.msra.mxu0 %v1139_v56 }
 0x375   : > { %1208 = vmatprep.subr.mxu0 %v1156_v62 }
 0x376   : > { %1209 = vmatpush1.msra.mxu0 %v1155_v2 }
 0x377   : > { %1336 = vmatmul.mubr.msk.f32.vlgmr.msra.gmra.mxu0 %vm599_vm14, %v1154_v0 }
 0x437   : > { %v1244_v24 = vpop.f32.mrf.mxu0 }
 0x438   : > { %v1245_v6 = vadd.f32 %v1244_v24, %v1167_v3 }
 0x439   : > { %v1246_v4 = vpop.f32.mrf.mxu0 }
 0x43a   : > { %v1247_v7 = vadd.f32 %v1246_v4, %v1167_v3 }
 0x43c   : > { %v1251_v39 = vcombine.low %v1245_v6, %v1247_v7 }
 0x43e   : > { %1337 = vst.sshfl [vmem:[%s278_s13] sm:$0x33 pattern:$0x76325410] %v1251_v39 }
 0x43f PF: > { %s17_s24 = sadd.s32 1, %s1399_s24  }
 0x440   : > { %p14_p4 = scmp.ge.s32.totalorder %s17_s24, 4  }
 0x442   :  { %16 = sbr.rel (!%p14_p4) target bundleno = 1 (0x1), region = 78 }

</bundles_post_ra>
